<compile_context>
chip_gen: v7x
topology: tpu7x:2x2x1
jax: 0.10.0
libtpu: 0.0.40
codegen_flags: <defaults>
</compile_context>

<pallas_src>
import jax
import jax.numpy as jnp
from jax.experimental import pallas as pl
from jax.experimental.pallas import tpu as pltpu

# Max M (batch) tile per streamed-A dtype width; the VMEM-budget loop below may
# shrink it further.  Larger tiles amortize the ~0.35 us fixed per-grid-step
# overhead (measured mem-bound kernels hit ~85% of HBM roofline at 512-1024).
_TM_MAX_F32 = 512
_TM_MAX_BF16 = 1024

# Conservative per-kernel VMEM working-set target (double-buffered A + resident
# kernel + double-buffered output).  Fits every generation once the scoped limit
# is raised: v5e/v6e 128 MiB physical, v7x 64 MiB per TensorCore.
_VMEM_TARGET = 20 << 20
_VMEM_LIMIT_CAP = 48 << 20

# Below this many MACs, XLA's fused dot beats any pallas_call (launch + grid
# step overhead dominates the <1 us of work).
_PALLAS_MIN_MACS = 1 << 20


def _round_up(x: int, m: int) -> int:
    return ((x + m - 1) // m) * m


def _vmem_bytes(tm: int, k: int, n_pad: int, a_item: int, k_item: int) -> int:
    a_buf = 2 * tm * k * a_item        # double-buffered streamed A tile
    b_buf = 2 * k * n_pad * k_item     # resident kernel (Pallas allocs 2 bufs)
    o_buf = 2 * tm * n_pad * 4         # double-buffered f32 output tile
    return a_buf + b_buf + o_buf


def topo_matmul_kernel(a_ref, b_ref, o_ref):
    # a_ref: (tm, K)     flattened persistence diagrams (pair axis folded into K)
    # b_ref: (K, N_pad)  VMEM-resident, row-duplicated, lane-padded topo kernel
    # o_ref: (tm, N_pad) lane-dense output tile
    # Single K block -> no accumulator scratch, no init/finalize epilogue.
    o_ref[...] = jnp.dot(
        a_ref[...], b_ref[...], preferred_element_type=jnp.float32
    ).astype(o_ref.dtype)


def prepare_topological_kernel(kernel, *, dtype=jnp.float32):
    """One-time parameter prep (call at init, NOT per forward pass).

    kernel : (out_c, in_c, D) learned topological kernel.
    Returns a (K, N_pad) matrix with K = in_c*D*2 (un-padded): the kernel is
    flattened, transposed once, each (j, d) row duplicated per (birth, death)
    pair element, and the output axis zero-padded to a multiple of 128 lanes so
    output stores are unmasked.

    dtype: use jnp.bfloat16 on v5e/v6e/v7x for production (halves HBM/VMEM
    bytes and doubles MXU rate; accumulation stays f32 in the kernel).  Keep
    f32 only when exact parity with an f32 reference is required.
    """
    out_c, in_c, D = kernel.shape
    kern2d = kernel.reshape(out_c, in_c * D).T        # (in_c*D, out_c); once, at init
    kern_rep = jnp.repeat(kern2d, 2, axis=0)          # one copy per pair elem -> (K, out_c)
    n_pad = _round_up(out_c, 128)                     # lane-dense output stores
    kern_pad = jnp.pad(kern_rep, ((0, 0), (0, n_pad - out_c)))
    return kern_pad.astype(dtype)


def _choose_tm(batch: int, granule: int, tm_max: int) -> int:
    if batch <= granule:
        # One block equal to the full M extent (allowed by the (8,128) rule).
        return batch
    # Expose >=2 parallel M blocks when possible (v7x: one per TensorCore).
    return min(tm_max, _round_up(pl.cdiv(batch, 2), granule))


def topological_conv(x, filtration, diagrams, kernel_prepped, out_channels,
                     *, use_pallas=None):
    """Forward pass of TopologicalConv.

    x, filtration : kept only for interface parity with the reference module;
        they feed _compute_persistence, a torch.randn stub that ignores its
        input, so they never affect the output and no work is done on them.
        TODO(synk): _compute_persistence is a torch.randn placeholder in the
        reference; the deterministic `diagrams` array stands in for its output.
    diagrams       : (B, in_c, D, 2) persistence diagrams.
    kernel_prepped : output of prepare_topological_kernel().
    returns        : (B, out_channels) float32.
    """
    del x, filtration  # dead in the reference forward (stub ignores them)

    B, in_c, D, _ = diagrams.shape
    K = in_c * D * 2
    k_rows, n_pad = kernel_prepped.shape
    assert k_rows == K, "kernel_prepped does not match diagrams' (in_c, D)"

    k_dtype = kernel_prepped.dtype
    a_item = jnp.dtype(k_dtype).itemsize
    k_item = a_item

    # Contiguous reshape (view) + dtype match.  For bf16, prefer producing
    # `diagrams` already in bf16 so the cast fuses upstream.
    a = diagrams.reshape(B, K).astype(k_dtype)

    if use_pallas is None:
        use_pallas = (B * out_channels * K) >= _PALLAS_MIN_MACS

    # Resident-kernel footprint; if it can't live in VMEM (unrealistically large
    # K*N for this layer), fall back to XLA's dot rather than mis-tile.
    resident_bytes = 2 * K * n_pad * k_item
    if not use_pallas or resident_bytes > _VMEM_TARGET:
        return jnp.dot(
            a.astype(jnp.float32),
            kernel_prepped[:, :out_channels].astype(jnp.float32),
        )

    # bf16 min tile is (16, 128) -> round the M tile to 16 for 2-byte dtypes.
    granule = 16 if a_item == 2 else 8
    tm_max = _TM_MAX_BF16 if a_item == 2 else _TM_MAX_F32
    tm = _choose_tm(B, granule, tm_max)

    # Shrink the M tile until the double-buffered working set fits the budget.
    while tm > granule and _vmem_bytes(tm, K, n_pad, a_item, k_item) > _VMEM_TARGET:
        tm = max(granule, _round_up(tm // 2, granule))

    vmem_need = _vmem_bytes(tm, K, n_pad, a_item, k_item)
    vmem_limit = int(min(max(2 * vmem_need, 16 << 20), _VMEM_LIMIT_CAP))

    grid = (pl.cdiv(B, tm),)  # ragged last M block handled by Pallas masking

    cost = pl.CostEstimate(
        flops=2 * B * K * out_channels,
        bytes_accessed=B * K * a_item + K * n_pad * k_item + B * n_pad * 4,
        transcendentals=0,
    )

    out_padded = pl.pallas_call(
        topo_matmul_kernel,
        out_shape=jax.ShapeDtypeStruct((B, n_pad), jnp.float32),
        grid_spec=pltpu.PrefetchScalarGridSpec(
            num_scalar_prefetch=0,
            grid=grid,
            in_specs=[
                # Streamed batch tile: block K dim == full array dim (no pad).
                pl.BlockSpec((tm, K), lambda i: (i, 0)),
                # Constant index map -> fetched once, VMEM-resident thereafter.
                pl.BlockSpec((K, n_pad), lambda i: (0, 0)),
            ],
            out_specs=pl.BlockSpec((tm, n_pad), lambda i: (i, 0)),
        ),
        compiler_params=pltpu.CompilerParams(
            dimension_semantics=("parallel",),
            vmem_limit_bytes=vmem_limit,
        ),
        cost_estimate=cost,
    )(a, kernel_prepped)

    return out_padded[:, :out_channels]


if __name__ == "__main__":
    B, IN_C, OUT_C, MAX_DIM = 4, 4, 8, 2
    D = MAX_DIM + 1

    key = jax.random.PRNGKey(0)
    k_x, k_filt, k_kern, k_diag = jax.random.split(key, 4)

    x = jax.random.normal(k_x, (B, IN_C, OUT_C), jnp.float32)
    filtration = jax.random.normal(k_filt, (OUT_C, IN_C), jnp.float32)
    kernel = jax.random.normal(k_kern, (OUT_C, IN_C, D), jnp.float32)
    # Deterministic persistence diagrams (reference draws torch.randn per channel).
    diagrams = jax.random.normal(k_diag, (B, IN_C, D, 2), jnp.float32)

    # One-time parameter prep (init-time, not per forward call).  f32 here for
    # exact parity with the f32 reference; use bf16 in production.
    kern_prepped = prepare_topological_kernel(kernel, dtype=jnp.float32)

    # Force the Pallas path so the kernel is exercised even at this toy size;
    # the auto-dispatch (use_pallas=None) would pick the plain dot here.
    out = topological_conv(x, filtration, diagrams, kern_prepped, OUT_C,
                           use_pallas=True)
    out = jax.block_until_ready(out)

    # Pure-JAX reference of the exact forward semantics.
    ref = jnp.einsum("bjdk,ijd->bi", diagrams, kernel)
    assert out.shape == (B, OUT_C)
    assert jnp.allclose(out, ref, atol=1e-4, rtol=1e-4), "mismatch vs reference"

    print("KERNEL_OK")
</pallas_src>

<mosaic_0001>
module attributes {stable_mosaic.version = 11 : i64} {
  func.func @topo_matmul_kernel(%arg0: i32, %arg1: memref<4x24xf32, #tpu.memory_space<vmem>>, %arg2: memref<24x128xf32, #tpu.memory_space<vmem>>, %arg3: memref<4x128xf32, #tpu.memory_space<vmem>>) attributes {dimension_semantics = [#tpu.dimension_semantics<parallel>], iteration_bounds = array<i64: 1>, scalar_prefetch = 0 : i64, scratch_operands = 0 : i64, tpu.core_type = #tpu.core_type<tc>, window_params = [{transform_indices = @transform_0, window_bounds = array<i64: 4, 24>}, {pipeline_mode = #tpu.pipeline_mode<synchronous>, transform_indices = @transform_1, window_bounds = array<i64: 24, 128>}, {transform_indices = @transform_2, window_bounds = array<i64: 4, 128>}]} {
    %c0 = arith.constant 0 : index
    %c0_0 = arith.constant 0 : index
    %0 = vector.load %arg1[%c0, %c0_0] : memref<4x24xf32, #tpu.memory_space<vmem>>, vector<4x24xf32>
    %c0_1 = arith.constant 0 : index
    %c0_2 = arith.constant 0 : index
    %1 = vector.load %arg2[%c0_1, %c0_2] : memref<24x128xf32, #tpu.memory_space<vmem>>, vector<24x128xf32>
    %cst = arith.constant dense<0.000000e+00> : vector<4x128xf32>
    %2 = tpu.matmul %0, %1, %cst {dimension_numbers = #tpu.dot_dimension_numbers<[1], [0], [0], [1], [0, 0, 1, 1], [], []>} : vector<4x24xf32>, vector<24x128xf32>, vector<4x128xf32> -> vector<4x128xf32>
    %c0_3 = arith.constant 0 : index
    %c0_4 = arith.constant 0 : index
    %3 = vector.load %arg3[%c0_3, %c0_4] : memref<4x128xf32, #tpu.memory_space<vmem>>, vector<4x128xf32>
    tpu.vector_store %arg3[%c0_3, %c0_4], %2 {strides = array<i32>} : memref<4x128xf32, #tpu.memory_space<vmem>>, vector<4x128xf32>,
    return
  }
  func.func @transform_0(%arg0: i32) -> (i32, i32) {
    %c0_i32 = arith.constant 0 : i32
    %c0_i32_0 = arith.constant 0 : i32
    return %arg0, %c0_i32 : i32, i32
  }
  func.func @transform_1(%arg0: i32) -> (i32, i32) {
    %c0_i32 = arith.constant 0 : i32
    %c0_i32_0 = arith.constant 0 : i32
    %c0_i32_1 = arith.constant 0 : i32
    return %c0_i32, %c0_i32_0 : i32, i32
  }
  func.func @transform_2(%arg0: i32) -> (i32, i32) {
    %c0_i32 = arith.constant 0 : i32
    %c0_i32_0 = arith.constant 0 : i32
    return %arg0, %c0_i32 : i32, i32
  }
}

</mosaic_0001>

<bundles_post_ra>
// kernel: tpu_custom_call.1
= control target key start
LH: loop header
LB: loop body
LE: loop exit
PB: predicated region body
PF: predicated region fallthrough
CT: control target
= control target key end

     0   :  { %7 = vsyncpa [#allocation3], 0  ;;  %s296_s0 = inlined_call_operand.hbm [shape: f32[4,24], index: 0, kind: input, shape index: {}]   ;;  %s297_s1 = inlined_call_operand.hbm [shape: f32[24,128], index: 1, kind: input, shape index: {}]   ;;  %s298_s2 = inlined_call_operand.hbm [shape: f32[4,128], index: 2, kind: output, shape index: {}]  }
   0x1   :  { %8 = vsyncpa [#allocation6], 0 }
   0x2   :  { %9 = vsyncpa [#allocation4], 0  ;;  %s230_s9 = smov [#allocation2]   ;;  %s231_s11 = smov [#allocation5]  }
   0x3   :  { %s16_s10 = sshll.u32 %s230_s9, 4  ;;  %s25_s12 = sshll.u32 %s231_s11, 4  ;;  %s17_s10 = int_to_ptr.vmem [resolvable:$true] %s16_s10  ;;  %s253_s12 = int_to_ptr.vmem [resolvable:$true] %s25_s12 }
   0x4   :  { %s158_s15 = scalar_lea.hbm %s296_s0, 64 }
   0x5   :  { %p159_p0 = scmp.ne.s32.totalorder %s296_s0, %s158_s15  ;;  %p162_p1 = scmp.lt.u32.totalorder %s158_s15, %s296_s0 }
   0x7   :  { %p164_p2 = pnand %p162_p1, %p159_p0 }
   0x9   :  { %167 = shalt.err (!%p164_p2)
}
   0xa   :  { %s168_s20 = scalar_lea.vmem %s17_s10, 64  ;;  %p173_p4 = scmp.lt.s32.totalorder %s17_s10, %s17_s10 }
   0xb   :  { %p169_p3 = scmp.ne.s32.totalorder %s17_s10, %s168_s20  ;;  %p174_p5 = scmp.lt.s32.totalorder %s168_s20, %s168_s20 }
   0xd   :  { %p175_p6 = por %p174_p5, %p173_p4 }
   0xf   :  { %p176_p7 = pnand %p175_p6, %p169_p3 }
  0x11   :  { %179 = shalt.err (!%p176_p7)
}
  0x12   :  { %19 = dma.hbm_to_vmem [thread:$0]  %s296_s0, 64, %s17_s10, [#allocation3]  }
  0x13   :  { %s180_s25 = scalar_lea.hbm %s297_s1, 384 }
  0x14   :  { %p181_p8 = scmp.ne.s32.totalorder %s297_s1, %s180_s25  ;;  %p184_p9 = scmp.lt.u32.totalorder %s180_s25, %s297_s1 }
  0x16   :  { %p186_p10 = pnand %p184_p9, %p181_p8 }
  0x18   :  { %189 = shalt.err (!%p186_p10)
}
  0x19   :  { %s190_s30 = scalar_lea.vmem %s253_s12, 384  ;;  %p195_p12 = scmp.lt.s32.totalorder %s253_s12, %s253_s12 }
  0x1a   :  { %p191_p11 = scmp.ne.s32.totalorder %s253_s12, %s190_s30  ;;  %p196_p13 = scmp.lt.s32.totalorder %s190_s30, %s190_s30 }
  0x1c   :  { %p197_p0 = por %p196_p13, %p195_p12 }
  0x1e   :  { %p198_p1 = pnand %p197_p0, %p191_p11 }
  0x20   :  { %201 = shalt.err (!%p198_p1)
}
  0x21   :  { %s232_s0 = smov 128   ;;  %s233_s3 = smov 8  }
  0x22   :  { %31 = dma.hbm_to_vmem [thread:$0]  %s297_s1, 384, %s253_s12, [#allocation6], %s232_s0, %s232_s0, %s233_s3  }
  0x23   :  { %224 = dma.done.wait [#allocation3], 64  }
  0x24   :  { %225 = vsyncadd [#allocation3], 4294967232 }
  0x25   :  { %226 = dma.done.wait [#allocation6], 384  }
  0x26   :  { %227 = vsyncadd [#allocation6], 4294966912  ;;  %v234_v0 = vmov 0.0|0.0   ;;  %vm235_vm0 = vmmov 0   ;;  %v236_v1 = vmov 0.0   ;;  %v39_v2 = vld [vmem:[#allocation5] sm:$0xff] }
  0x27   :  { %147 = vmatprep.subr.bf16.mxu0 %v234_v0  ;;  %144 = vmatprep.mubr.msk.f32.mxu0 %vm235_vm0, %v236_v1  ;;  %v40_v3 = vld [vmem:[#allocation5 + $0x8] sm:$0xff]  ;;  %v41_v5 = vld [vmem:[#allocation5 + $0x10] sm:$0xff]  ;;  %v38_v6 = vld [vmem:[#allocation2] sm:$0xf]  ;;  %vm42_vm1 = vcmask 195584   ;;  %s237_s1 = smov [#allocation7]  }
  0x28   :  { %v148_v4 = vpack.c.bf16 %v40_v3, %v39_v2  ;;  %s123_s6 = sshll.u32 %s237_s1, 4  ;;  %s124_s6 = int_to_ptr.vmem [resolvable:$true] %s123_s6 }
  0x29   :  { %s202_s7 = scalar_lea.vmem %s124_s6, 64  ;;  %p207_p3 = scmp.lt.s32.totalorder %s124_s6, %s124_s6 }
  0x2a   :  { %149 = vmatpush3.bf16.msra.mxu0 %v148_v4  ;;  %p203_p2 = scmp.ne.s32.totalorder %s124_s6, %s202_s7  ;;  %p208_p4 = scmp.lt.s32.totalorder %s202_s7, %s202_s7 }
  0x2b   :  { %142 = vmatprep.subr.mxu0 %v236_v1 }
  0x2c   :  { %p209_p5 = por %p208_p4, %p207_p3 }
  0x2e   :  { %143 = vmatpush3.msra.mxu0 %v41_v5  ;;  %p210_p6 = pnand %p209_p5, %p203_p2 }
  0x2f   :  { %145 = vmatmul.mubr.msk.f32.vlgmr.msra.gmra.mrb[0].mxu0 %vm42_vm1, %v38_v6 }
 0x102   :  { %v112_v7 = vpop.f32.mrb[0].mxu0 }
 0x103   :  { %116 = vst [vmem:[#allocation7] sm:$0xf] %v112_v7  ;;  %v146_v8 = vpop.f32.mrb[1].mxu0 }
 0x104   :  { %213 = shalt.err (!%p210_p6)
}
 0x105   :  { %s214_s10 = scalar_lea.hbm %s298_s2, 64 }
 0x106   :  { %p215_p7 = scmp.ne.s32.totalorder %s298_s2, %s214_s10  ;;  %p218_p8 = scmp.lt.u32.totalorder %s214_s10, %s298_s2 }
 0x108   :  { %p220_p9 = pnand %p218_p8, %p215_p7 }
 0x10a   :  { %223 = shalt.err (!%p220_p9)
}
 0x10b   :  { %126 = dma.vmem_to_hbm [thread:$0]  %s124_s6, 64, %s298_s2, [#allocation4]  }
 0x10c   :  { %228 = dma.done.wait [#allocation4], 64  }
 0x10d   :  { %229 = vsyncadd [#allocation4], 4294967232 }
 0x10e   :  { %130 = vsyncpa [#allocation3], 1 }
 0x10f   :  { %131 = vsyncpa [#allocation6], 1 }
 0x110   :  { %132 = vsyncpa [#allocation4], 1 }

</bundles_post_ra>
